<compile_context>
chip_gen: v7x
topology: tpu7x:2x2x1
jax: 0.10.0
libtpu: 0.0.40
codegen_flags: <defaults>
</compile_context>

<pallas_src>
import functools

import jax
import jax.numpy as jnp
from jax import lax
from jax.experimental import pallas as pl
from jax.experimental.pallas import tpu as pltpu

BN_EPS = 1e-5


def _round_up(x, m):
    return (x + m - 1) // m * m


# --------------------------- Pass 1: GEMM + stats ---------------------------
def _matmul_stats_kernel(p_ref, w_ref, y_ref, sum_ref, sq_ref):
    @pl.when(pl.program_id(0) == 0)
    def _init():
        sum_ref[...] = jnp.zeros_like(sum_ref)
        sq_ref[...] = jnp.zeros_like(sq_ref)

    # Conv tile as matmul on the MXU (f32 accumulation).
    y = jnp.dot(p_ref[...], w_ref[...], preferred_element_type=jnp.float32)
    y_ref[...] = y
    # Per-channel partial sums for BatchNorm (padded rows are zero -> harmless).
    sum_ref[...] += jnp.sum(y, axis=0, keepdims=True)
    sq_ref[...] += jnp.sum(y * y, axis=0, keepdims=True)


# --------------------------- Pass 2: BN + ReLU ------------------------------
def _bn_relu_kernel(y_ref, scale_ref, shift_ref, o_ref):
    o_ref[...] = jnp.maximum(
        y_ref[...] * scale_ref[...] + shift_ref[...], 0.0
    ).astype(o_ref.dtype)


def _im2col_3d(x, kernel_size, stride, padding):
    """x: (N, Cin, D, H, W) -> patches (N*Do*Ho*Wo, Cin*kd*kh*kw)."""
    n, cin, d, h, w = x.shape
    kd = kh = kw = kernel_size
    p = padding
    s = stride
    xp = jnp.pad(x, ((0, 0), (0, 0), (p, p), (p, p), (p, p)))
    do = (d + 2 * p - kd) // s + 1
    ho = (h + 2 * p - kh) // s + 1
    wo = (w + 2 * p - kw) // s + 1
    slabs = []
    for a in range(kd):
        for b in range(kh):
            for c in range(kw):
                slabs.append(xp[:, :,
                                a:a + s * do:s,
                                b:b + s * ho:s,
                                c:c + s * wo:s])  # (N, Cin, Do, Ho, Wo)
    pat = jnp.stack(slabs, axis=0)                  # (K3, N, Cin, Do, Ho, Wo)
    # -> (N, Do, Ho, Wo, Cin, K3): Cin-major then (kd,kh,kw), matching the
    #    PyTorch weight flattening order (Cout, Cin, kd, kh, kw).
    pat = jnp.transpose(pat, (1, 3, 4, 5, 2, 0))
    return pat.reshape(n * do * ho * wo, cin * kd * kh * kw), (n, do, ho, wo)


def _choose_tile_m(m, k_pad, c_pad, budget_bytes=24 * 1024 * 1024):
    """Pick an M tile so double-buffered P and Y tiles fit a VMEM budget
    that is safe on all generations (including v7x's 64 MiB VMEM)."""
    bytes_per_row = 4 * 2 * (k_pad + c_pad)   # f32, 2-deep buffering
    tm = budget_bytes // bytes_per_row
    tm = max(8, min(1024, (tm // 8) * 8))
    tm = min(tm, _round_up(m, 8))
    return int(tm)


@functools.partial(jax.jit, static_argnames=("kernel_size", "stride", "padding"))
def basic_conv3d(x, weight, *, kernel_size, stride, padding):
    """x: (N, Cin, D, H, W) f32; weight: (Cout, Cin, kd, kh, kw) f32.
    Returns (N, Cout, Do, Ho, Wo) f32 (training-mode BN, gamma=1, beta=0)."""
    cout = weight.shape[0]
    patches, (n, do, ho, wo) = _im2col_3d(x, kernel_size, stride, padding)
    m, k = patches.shape
    w2d = weight.reshape(cout, k).T                     # (K, Cout)

    # Lane/MXU-friendly padding.
    k_pad = _round_up(k, 128)
    c_pad = _round_up(cout, 128)
    tm = _choose_tile_m(m, k_pad, c_pad)
    m_pad = _round_up(m, tm)

    p_pad = jnp.zeros((m_pad, k_pad), jnp.float32).at[:m, :k].set(patches)
    w_pad = jnp.zeros((k_pad, c_pad), jnp.float32).at[:k, :cout].set(w2d)

    grid = (m_pad // tm,)
    vmem_needed = 4 * (2 * tm * k_pad + 2 * k_pad * c_pad
                       + 2 * tm * c_pad + 8 * c_pad)
    vmem_limit = int(min(max(2 * vmem_needed, 32 * 1024 * 1024),
                         48 * 1024 * 1024))

    # ---- Pass 1: tiled GEMM + per-channel sum / sumsq accumulation ----
    y2d, ysum, ysq = pl.pallas_call(
        _matmul_stats_kernel,
        out_shape=(
            jax.ShapeDtypeStruct((m_pad, c_pad), jnp.float32),
            jax.ShapeDtypeStruct((1, c_pad), jnp.float32),
            jax.ShapeDtypeStruct((1, c_pad), jnp.float32),
        ),
        grid=grid,
        in_specs=[
            pl.BlockSpec((tm, k_pad), lambda i: (i, 0)),
            pl.BlockSpec((k_pad, c_pad), lambda i: (0, 0)),
        ],
        out_specs=(
            pl.BlockSpec((tm, c_pad), lambda i: (i, 0)),
            pl.BlockSpec((1, c_pad), lambda i: (0, 0)),
            pl.BlockSpec((1, c_pad), lambda i: (0, 0)),
        ),
        compiler_params=pltpu.CompilerParams(
            dimension_semantics=("arbitrary",),   # stats accumulate across M
            vmem_limit_bytes=vmem_limit,
        ),
        cost_estimate=pl.CostEstimate(
            flops=2 * m * k * cout,
            transcendentals=0,
            bytes_accessed=4 * (m_pad * k_pad + k_pad * c_pad + m_pad * c_pad),
        ),
    )(p_pad, w_pad)

    # ---- Finalize BN stats (tiny per-channel vectors; plain XLA) ----
    mean = ysum[0] / float(m)
    var = jnp.maximum(ysq[0] / float(m) - mean * mean, 0.0)
    inv = lax.rsqrt(var + BN_EPS)
    scale = inv[None, :]                 # (1, c_pad)
    shift = (-mean * inv)[None, :]       # (1, c_pad)

    # ---- Pass 2: normalize + ReLU (parallel over M tiles) ----
    out2d = pl.pallas_call(
        _bn_relu_kernel,
        out_shape=jax.ShapeDtypeStruct((m_pad, c_pad), jnp.float32),
        grid=grid,
        in_specs=[
            pl.BlockSpec((tm, c_pad), lambda i: (i, 0)),
            pl.BlockSpec((1, c_pad), lambda i: (0, 0)),
            pl.BlockSpec((1, c_pad), lambda i: (0, 0)),
        ],
        out_specs=pl.BlockSpec((tm, c_pad), lambda i: (i, 0)),
        compiler_params=pltpu.CompilerParams(
            dimension_semantics=("parallel",),
            vmem_limit_bytes=vmem_limit,
        ),
        cost_estimate=pl.CostEstimate(
            flops=2 * m_pad * c_pad,
            transcendentals=0,
            bytes_accessed=4 * 2 * m_pad * c_pad,
        ),
    )(y2d, scale, shift)

    out = out2d[:m, :cout].reshape(n, do, ho, wo, cout)
    return jnp.transpose(out, (0, 4, 1, 2, 3))          # back to NCDHW


def _reference(x, weight, *, kernel_size, stride, padding):
    """Pure-JAX reference matching the PyTorch forward (training-mode BN)."""
    y = lax.conv_general_dilated(
        x, weight,
        window_strides=(stride, stride, stride),
        padding=[(padding, padding)] * 3,
        dimension_numbers=("NCDHW", "OIDHW", "NCDHW"),
    )
    mean = jnp.mean(y, axis=(0, 2, 3, 4), keepdims=True)
    var = jnp.mean((y - mean) ** 2, axis=(0, 2, 3, 4), keepdims=True)
    yn = (y - mean) * lax.rsqrt(var + BN_EPS)
    return jnp.maximum(yn, 0.0)


if __name__ == "__main__":
    key = jax.random.PRNGKey(0)

    # Small shapes consistent with the module.
    N, Cin, D, H, W = 2, 4, 4, 8, 8
    Cout, ksize, stride, padding = 8, 3, 1, 1

    x = jax.random.normal(key, (N, Cin, D, H, W), dtype=jnp.float32)

    # Deterministic parameter init per BasicConv3d.__init__:
    #   conv.weight.data.fill_(1) (bias=False); bn.weight=1, bn.bias=0
    #   (gamma/beta handled implicitly as 1/0 in the kernel epilogue).
    conv_weight = jnp.ones((Cout, Cin, ksize, ksize, ksize), dtype=jnp.float32)

    out = basic_conv3d(x, conv_weight, kernel_size=ksize, stride=stride,
                       padding=padding)
    out = jax.block_until_ready(out)

    ref = _reference(x, conv_weight, kernel_size=ksize, stride=stride,
                     padding=padding)
    ref = jax.block_until_ready(ref)

    assert out.shape == (N, Cout, D, H, W), out.shape
    assert jnp.allclose(out, ref, atol=2e-4, rtol=2e-4), (
        float(jnp.max(jnp.abs(out - ref))))

    print("KERNEL_OK")
</pallas_src>

<mosaic_0001>
module attributes {stable_mosaic.version = 11 : i64} {
  func.func @_matmul_stats_kernel(%arg0: i32, %arg1: memref<512x128xf32, #tpu.memory_space<vmem>>, %arg2: memref<128x128xf32, #tpu.memory_space<vmem>>, %arg3: memref<512x128xf32, #tpu.memory_space<vmem>>, %arg4: memref<1x128xf32, #tpu.memory_space<vmem>>, %arg5: memref<1x128xf32, #tpu.memory_space<vmem>>) attributes {dimension_semantics = [#tpu.dimension_semantics<arbitrary>], iteration_bounds = array<i64: 1>, scalar_prefetch = 0 : i64, scratch_operands = 0 : i64, tpu.core_type = #tpu.core_type<tc>, window_params = [{transform_indices = @transform_0, window_bounds = array<i64: 512, 128>}, {pipeline_mode = #tpu.pipeline_mode<synchronous>, transform_indices = @transform_1, window_bounds = array<i64: 128, 128>}, {transform_indices = @transform_2, window_bounds = array<i64: 512, 128>}, {pipeline_mode = #tpu.pipeline_mode<synchronous>, transform_indices = @transform_3, window_bounds = array<i64: 1, 128>}, {pipeline_mode = #tpu.pipeline_mode<synchronous>, transform_indices = @transform_4, window_bounds = array<i64: 1, 128>}]} {
    %c0_i32 = arith.constant 0 : i32
    %0 = arith.cmpi eq, %arg0, %c0_i32 : i32
    %1 = arith.extui %0 : i1 to i32
    %c0_i32_0 = arith.constant 0 : i32
    %2 = arith.cmpi ne, %1, %c0_i32_0 : i32
    scf.if %2 {
      %cst_16 = arith.constant 0.000000e+00 : f32
      %18 = vector.broadcast %cst_16 : f32 to vector<1x128xf32>
      %c0_17 = arith.constant 0 : index
      %c0_18 = arith.constant 0 : index
      %19 = vector.load %arg4[%c0_17, %c0_18] : memref<1x128xf32, #tpu.memory_space<vmem>>, vector<1x128xf32>
      tpu.vector_store %arg4[%c0_17, %c0_18], %18 {strides = array<i32>} : memref<1x128xf32, #tpu.memory_space<vmem>>, vector<1x128xf32>,
      %cst_19 = arith.constant 0.000000e+00 : f32
      %20 = vector.broadcast %cst_19 : f32 to vector<1x128xf32>
      %c0_20 = arith.constant 0 : index
      %c0_21 = arith.constant 0 : index
      %21 = vector.load %arg5[%c0_20, %c0_21] : memref<1x128xf32, #tpu.memory_space<vmem>>, vector<1x128xf32>
      tpu.vector_store %arg5[%c0_20, %c0_21], %20 {strides = array<i32>} : memref<1x128xf32, #tpu.memory_space<vmem>>, vector<1x128xf32>,
    } else {
    }
    %c0 = arith.constant 0 : index
    %c0_1 = arith.constant 0 : index
    %3 = vector.load %arg1[%c0, %c0_1] : memref<512x128xf32, #tpu.memory_space<vmem>>, vector<512x128xf32>
    %c0_2 = arith.constant 0 : index
    %c0_3 = arith.constant 0 : index
    %4 = vector.load %arg2[%c0_2, %c0_3] : memref<128x128xf32, #tpu.memory_space<vmem>>, vector<128x128xf32>
    %cst = arith.constant dense<0.000000e+00> : vector<512x128xf32>
    %5 = tpu.matmul %3, %4, %cst {dimension_numbers = #tpu.dot_dimension_numbers<[1], [0], [0], [1], [0, 0, 1, 1], [], []>} : vector<512x128xf32>, vector<128x128xf32>, vector<512x128xf32> -> vector<512x128xf32>
    %c0_4 = arith.constant 0 : index
    %c0_5 = arith.constant 0 : index
    %6 = vector.load %arg3[%c0_4, %c0_5] : memref<512x128xf32, #tpu.memory_space<vmem>>, vector<512x128xf32>
    tpu.vector_store %arg3[%c0_4, %c0_5], %5 {strides = array<i32>} : memref<512x128xf32, #tpu.memory_space<vmem>>, vector<512x128xf32>,
    %c0_6 = arith.constant 0 : index
    %c0_7 = arith.constant 0 : index
    %7 = vector.load %arg4[%c0_6, %c0_7] : memref<1x128xf32, #tpu.memory_space<vmem>>, vector<1x128xf32>
    %cst_8 = arith.constant dense<0.000000e+00> : vector<128xf32>
    %8 = vector.multi_reduction <add>, %5, %cst_8 [0] : vector<512x128xf32> to vector<128xf32>
    %9 = vector.shape_cast %8 : vector<128xf32> to vector<1x128xf32>
    %10 = arith.addf %7, %9 : vector<1x128xf32>
    %c0_9 = arith.constant 0 : index
    %c0_10 = arith.constant 0 : index
    %11 = vector.load %arg4[%c0_9, %c0_10] : memref<1x128xf32, #tpu.memory_space<vmem>>, vector<1x128xf32>
    tpu.vector_store %arg4[%c0_9, %c0_10], %10 {strides = array<i32>} : memref<1x128xf32, #tpu.memory_space<vmem>>, vector<1x128xf32>,
    %c0_11 = arith.constant 0 : index
    %c0_12 = arith.constant 0 : index
    %12 = vector.load %arg5[%c0_11, %c0_12] : memref<1x128xf32, #tpu.memory_space<vmem>>, vector<1x128xf32>
    %13 = arith.mulf %5, %5 : vector<512x128xf32>
    %cst_13 = arith.constant dense<0.000000e+00> : vector<128xf32>
    %14 = vector.multi_reduction <add>, %13, %cst_13 [0] : vector<512x128xf32> to vector<128xf32>
    %15 = vector.shape_cast %14 : vector<128xf32> to vector<1x128xf32>
    %16 = arith.addf %12, %15 : vector<1x128xf32>
    %c0_14 = arith.constant 0 : index
    %c0_15 = arith.constant 0 : index
    %17 = vector.load %arg5[%c0_14, %c0_15] : memref<1x128xf32, #tpu.memory_space<vmem>>, vector<1x128xf32>
    tpu.vector_store %arg5[%c0_14, %c0_15], %16 {strides = array<i32>} : memref<1x128xf32, #tpu.memory_space<vmem>>, vector<1x128xf32>,
    return
  }
  func.func @transform_0(%arg0: i32) -> (i32, i32) {
    %c0_i32 = arith.constant 0 : i32
    %c0_i32_0 = arith.constant 0 : i32
    return %arg0, %c0_i32 : i32, i32
  }
  func.func @transform_1(%arg0: i32) -> (i32, i32) {
    %c0_i32 = arith.constant 0 : i32
    %c0_i32_0 = arith.constant 0 : i32
    %c0_i32_1 = arith.constant 0 : i32
    return %c0_i32, %c0_i32_0 : i32, i32
  }
  func.func @transform_2(%arg0: i32) -> (i32, i32) {
    %c0_i32 = arith.constant 0 : i32
    %c0_i32_0 = arith.constant 0 : i32
    return %arg0, %c0_i32 : i32, i32
  }
  func.func @transform_3(%arg0: i32) -> (i32, i32) {
    %c0_i32 = arith.constant 0 : i32
    %c0_i32_0 = arith.constant 0 : i32
    %c0_i32_1 = arith.constant 0 : i32
    return %c0_i32, %c0_i32_0 : i32, i32
  }
  func.func @transform_4(%arg0: i32) -> (i32, i32) {
    %c0_i32 = arith.constant 0 : i32
    %c0_i32_0 = arith.constant 0 : i32
    %c0_i32_1 = arith.constant 0 : i32
    return %c0_i32, %c0_i32_0 : i32, i32
  }
}

module attributes {stable_mosaic.version = 11 : i64} {
  func.func @_bn_relu_kernel(%arg0: i32, %arg1: memref<512x128xf32, #tpu.memory_space<vmem>>, %arg2: memref<1x128xf32, #tpu.memory_space<vmem>>, %arg3: memref<1x128xf32, #tpu.memory_space<vmem>>, %arg4: memref<512x128xf32, #tpu.memory_space<vmem>>) attributes {dimension_semantics = [#tpu.dimension_semantics<parallel>], iteration_bounds = array<i64: 1>, scalar_prefetch = 0 : i64, scratch_operands = 0 : i64, tpu.core_type = #tpu.core_type<tc>, window_params = [{transform_indices = @transform_0, window_bounds = array<i64: 512, 128>}, {pipeline_mode = #tpu.pipeline_mode<synchronous>, transform_indices = @transform_1, window_bounds = array<i64: 1, 128>}, {pipeline_mode = #tpu.pipeline_mode<synchronous>, transform_indices = @transform_2, window_bounds = array<i64: 1, 128>}, {transform_indices = @transform_3, window_bounds = array<i64: 512, 128>}]} {
    %c0 = arith.constant 0 : index
    %c0_0 = arith.constant 0 : index
    %0 = vector.load %arg1[%c0, %c0_0] : memref<512x128xf32, #tpu.memory_space<vmem>>, vector<512x128xf32>
    %c0_1 = arith.constant 0 : index
    %c0_2 = arith.constant 0 : index
    %1 = vector.load %arg2[%c0_1, %c0_2] : memref<1x128xf32, #tpu.memory_space<vmem>>, vector<1x128xf32>
    %2 = vector.broadcast %1 : vector<1x128xf32> to vector<512x128xf32>
    %3 = arith.mulf %0, %2 : vector<512x128xf32>
    %c0_3 = arith.constant 0 : index
    %c0_4 = arith.constant 0 : index
    %4 = vector.load %arg3[%c0_3, %c0_4] : memref<1x128xf32, #tpu.memory_space<vmem>>, vector<1x128xf32>
    %5 = vector.broadcast %4 : vector<1x128xf32> to vector<512x128xf32>
    %6 = arith.addf %3, %5 : vector<512x128xf32>
    %cst = arith.constant 0.000000e+00 : f32
    %7 = vector.broadcast %cst : f32 to vector<512x128xf32>
    %8 = arith.maximumf %6, %7 : vector<512x128xf32>
    %c0_5 = arith.constant 0 : index
    %c0_6 = arith.constant 0 : index
    %9 = vector.load %arg4[%c0_5, %c0_6] : memref<512x128xf32, #tpu.memory_space<vmem>>, vector<512x128xf32>
    tpu.vector_store %arg4[%c0_5, %c0_6], %8 {strides = array<i32>} : memref<512x128xf32, #tpu.memory_space<vmem>>, vector<512x128xf32>,
    return
  }
  func.func @transform_0(%arg0: i32) -> (i32, i32) {
    %c0_i32 = arith.constant 0 : i32
    %c0_i32_0 = arith.constant 0 : i32
    return %arg0, %c0_i32 : i32, i32
  }
  func.func @transform_1(%arg0: i32) -> (i32, i32) {
    %c0_i32 = arith.constant 0 : i32
    %c0_i32_0 = arith.constant 0 : i32
    %c0_i32_1 = arith.constant 0 : i32
    return %c0_i32, %c0_i32_0 : i32, i32
  }
  func.func @transform_2(%arg0: i32) -> (i32, i32) {
    %c0_i32 = arith.constant 0 : i32
    %c0_i32_0 = arith.constant 0 : i32
    %c0_i32_1 = arith.constant 0 : i32
    return %c0_i32, %c0_i32_0 : i32, i32
  }
  func.func @transform_3(%arg0: i32) -> (i32, i32) {
    %c0_i32 = arith.constant 0 : i32
    %c0_i32_0 = arith.constant 0 : i32
    return %arg0, %c0_i32 : i32, i32
  }
}

</mosaic_0001>

<bundles_post_ra>
// kernel: basic_conv3d.3
= control target key start
LH: loop header
LB: loop body
LE: loop exit
PB: predicated region body
PF: predicated region fallthrough
CT: control target
= control target key end

     0   :  { %s896_s0 = inlined_call_operand.vmem [shape: f32[512,128], index: 0, kind: input, shape index: {}]   ;;  %s897_s1 = inlined_call_operand.vmem [shape: f32[1,128], index: 1, kind: input, shape index: {}]   ;;  %s898_s2 = inlined_call_operand.vmem [shape: f32[1,128], index: 2, kind: input, shape index: {}]   ;;  %s899_s3 = inlined_call_operand.vmem [shape: f32[512,128], index: 3, kind: output, shape index: {}]  }
   0x1   :  { %v14_v0 = vld [vmem:[%s896_s0] sm:$0xff]  ;;  %v15_v4 = vld [vmem:[%s896_s0 + $0x8] sm:$0xff]  ;;  %v16_v5 = vld [vmem:[%s896_s0 + $0x10] sm:$0xff] }
   0x2   :  { %v380_v1 = vld [vmem:[%s897_s1] ss:$0 sm:$0xff]  ;;  %v17_v6 = vld [vmem:[%s896_s0 + $0x18] sm:$0xff]  ;;  %v19_v11 = vld [vmem:[%s896_s0 + $0x28] sm:$0xff] }
   0x3   :  { %v385_v2 = vld [vmem:[%s898_s2] ss:$0 sm:$0xff]  ;;  %v85_v3 = vmul.f32 %v380_v1, %v14_v0  ;;  %v86_v7 = vmul.f32 %v380_v1, %v15_v4  ;;  %v87_v8 = vmul.f32 %v380_v1, %v16_v5  ;;  %v88_v9 = vmul.f32 %v380_v1, %v17_v6  ;;  %v20_v12 = vld [vmem:[%s896_s0 + $0x30] sm:$0xff]  ;;  %v21_v17 = vld [vmem:[%s896_s0 + $0x38] sm:$0xff] }
   0x4   :  { %v18_v10 = vld [vmem:[%s896_s0 + $0x20] sm:$0xff]  ;;  %v90_v15 = vmul.f32 %v380_v1, %v19_v11  ;;  %v91_v16 = vmul.f32 %v380_v1, %v20_v12  ;;  %v92_v21 = vmul.f32 %v380_v1, %v21_v17  ;;  %v23_v27 = vld [vmem:[%s896_s0 + $0x48] sm:$0xff]  ;;  %v24_v28 = vld [vmem:[%s896_s0 + $0x50] sm:$0xff] }
   0x5   :  { %v156_v13 = vadd.f32 %v385_v2, %v85_v3  ;;  %v89_v14 = vmul.f32 %v380_v1, %v18_v10  ;;  %v157_v18 = vadd.f32 %v385_v2, %v86_v7  ;;  %v158_v19 = vadd.f32 %v385_v2, %v87_v8  ;;  %v22_v22 = vld [vmem:[%s896_s0 + $0x40] sm:$0xff]  ;;  %v25_v29 = vld [vmem:[%s896_s0 + $0x58] sm:$0xff]  ;;  %v27_v35 = vld [vmem:[%s896_s0 + $0x68] sm:$0xff] }
   0x6   :  { %v159_v20 = vadd.f32 %v385_v2, %v88_v9  ;;  %v161_v25 = vadd.f32 %v385_v2, %v90_v15  ;;  %v162_v26 = vadd.f32 %v385_v2, %v91_v16  ;;  %v163_v33 = vadd.f32 %v385_v2, %v92_v21  ;;  %v26_v34 = vld [vmem:[%s896_s0 + $0x60] sm:$0xff]  ;;  %v28_v36 = vld [vmem:[%s896_s0 + $0x70] sm:$0xff]  ;;  %v29_v41 = vld [vmem:[%s896_s0 + $0x78] sm:$0xff] }
   0x7   :  { %v220_v23 = vmax.f32 %v156_v13, 0.0  ;;  %v160_v24 = vadd.f32 %v385_v2, %v89_v14  ;;  %v221_v30 = vmax.f32 %v157_v18, 0.0  ;;  %v222_v31 = vmax.f32 %v158_v19, 0.0  ;;  %v30_v54 = vld [vmem:[%s896_s0 + $0x80] sm:$0xff]  ;;  %v31_v59 = vld [vmem:[%s896_s0 + $0x88] sm:$0xff]  ;;  %v32_v60 = vld [vmem:[%s896_s0 + $0x90] sm:$0xff] }
   0x8   :  { %v223_v32 = vmax.f32 %v159_v20, 0.0  ;;  %v225_v38 = vmax.f32 %v161_v25, 0.0  ;;  %v226_v39 = vmax.f32 %v162_v26, 0.0  ;;  %v93_v40 = vmul.f32 %v380_v1, %v22_v22  ;;  %v33_v61 = vld [vmem:[%s896_s0 + $0x98] sm:$0xff]  ;;  %v34_v4 = vld [vmem:[%s896_s0 + $0xa0] sm:$0xff]  ;;  %v35_v5 = vld [vmem:[%s896_s0 + $0xa8] sm:$0xff] }
   0x9   :  { %284 = vst [vmem:[%s899_s3] sm:$0xff] %v220_v23  ;;  %v224_v37 = vmax.f32 %v160_v24, 0.0  ;;  %285 = vst [vmem:[%s899_s3 + $0x8] sm:$0xff] %v221_v30  ;;  %v227_v42 = vmax.f32 %v163_v33, 0.0  ;;  %v94_v43 = vmul.f32 %v380_v1, %v23_v27  ;;  %v95_v44 = vmul.f32 %v380_v1, %v24_v28  ;;  %v36_v6 = vld [vmem:[%s896_s0 + $0xb0] sm:$0xff]  ;;  %v37_v11 = vld [vmem:[%s896_s0 + $0xb8] sm:$0xff] }
   0xa   :  { %286 = vst [vmem:[%s899_s3 + $0x10] sm:$0xff] %v222_v31  ;;  %287 = vst [vmem:[%s899_s3 + $0x18] sm:$0xff] %v223_v32  ;;  %v96_v45 = vmul.f32 %v380_v1, %v25_v29  ;;  %v164_v46 = vadd.f32 %v385_v2, %v93_v40  ;;  %v97_v47 = vmul.f32 %v380_v1, %v26_v34  ;;  %v38_v24 = vld [vmem:[%s896_s0 + $0xc0] sm:$0xff]  ;;  %v39_v29 = vld [vmem:[%s896_s0 + $0xc8] sm:$0xff] }
   0xb   :  { %288 = vst [vmem:[%s899_s3 + $0x20] sm:$0xff] %v224_v37  ;;  %289 = vst [vmem:[%s899_s3 + $0x28] sm:$0xff] %v225_v38  ;;  %v98_v48 = vmul.f32 %v380_v1, %v27_v35  ;;  %v99_v49 = vmul.f32 %v380_v1, %v28_v36  ;;  %v165_v50 = vadd.f32 %v385_v2, %v94_v43  ;;  %v40_v30 = vld [vmem:[%s896_s0 + $0xd0] sm:$0xff]  ;;  %v41_v31 = vld [vmem:[%s896_s0 + $0xd8] sm:$0xff] }
   0xc   :  { %290 = vst [vmem:[%s899_s3 + $0x30] sm:$0xff] %v226_v39  ;;  %291 = vst [vmem:[%s899_s3 + $0x38] sm:$0xff] %v227_v42  ;;  %v166_v51 = vadd.f32 %v385_v2, %v95_v44  ;;  %v167_v52 = vadd.f32 %v385_v2, %v96_v45  ;;  %v100_v53 = vmul.f32 %v380_v1, %v29_v41  ;;  %v228_v55 = vmax.f32 %v164_v46, 0.0  ;;  %v42_v36 = vld [vmem:[%s896_s0 + $0xe0] sm:$0xff]  ;;  %v43_v37 = vld [vmem:[%s896_s0 + $0xe8] sm:$0xff] }
   0xd   :  { %v168_v56 = vadd.f32 %v385_v2, %v97_v47  ;;  %v169_v57 = vadd.f32 %v385_v2, %v98_v48  ;;  %v170_v58 = vadd.f32 %v385_v2, %v99_v49  ;;  %v229_v62 = vmax.f32 %v165_v50, 0.0  ;;  %v44_v38 = vld [vmem:[%s896_s0 + $0xf0] sm:$0xff]  ;;  %v45_v43 = vld [vmem:[%s896_s0 + $0xf8] sm:$0xff] }
   0xe   :  { %v230_v63 = vmax.f32 %v166_v51, 0.0  ;;  %v231_v0 = vmax.f32 %v167_v52, 0.0  ;;  %v171_v3 = vadd.f32 %v385_v2, %v100_v53  ;;  %292 = vst [vmem:[%s899_s3 + $0x40] sm:$0xff] %v228_v55  ;;  %v101_v10 = vmul.f32 %v380_v1, %v30_v54 }
   0xf   :  { %v232_v7 = vmax.f32 %v168_v56, 0.0  ;;  %v233_v8 = vmax.f32 %v169_v57, 0.0  ;;  %v234_v9 = vmax.f32 %v170_v58, 0.0  ;;  %293 = vst [vmem:[%s899_s3 + $0x48] sm:$0xff] %v229_v62  ;;  %v102_v13 = vmul.f32 %v380_v1, %v31_v59  ;;  %v46_v56 = vld [vmem:[%s896_s0 + $0x100] sm:$0xff]  ;;  %v48_v62 = vld [vmem:[%s896_s0 + $0x110] sm:$0xff] }
  0x10   :  { %294 = vst [vmem:[%s899_s3 + $0x50] sm:$0xff] %v230_v63  ;;  %295 = vst [vmem:[%s899_s3 + $0x58] sm:$0xff] %v231_v0  ;;  %v235_v12 = vmax.f32 %v171_v3, 0.0  ;;  %v103_v14 = vmul.f32 %v380_v1, %v32_v60  ;;  %v104_v15 = vmul.f32 %v380_v1, %v33_v61  ;;  %v172_v16 = vadd.f32 %v385_v2, %v101_v10  ;;  %v47_v61 = vld [vmem:[%s896_s0 + $0x108] sm:$0xff]  ;;  %v49_v63 = vld [vmem:[%s896_s0 + $0x118] sm:$0xff] }
  0x11   :  { %296 = vst [vmem:[%s899_s3 + $0x60] sm:$0xff] %v232_v7  ;;  %297 = vst [vmem:[%s899_s3 + $0x68] sm:$0xff] %v233_v8  ;;  %v105_v17 = vmul.f32 %v380_v1, %v34_v4  ;;  %v106_v18 = vmul.f32 %v380_v1, %v35_v5  ;;  %v107_v19 = vmul.f32 %v380_v1, %v36_v6  ;;  %v50_v6 = vld [vmem:[%s896_s0 + $0x120] sm:$0xff]  ;;  %v51_v7 = vld [vmem:[%s896_s0 + $0x128] sm:$0xff] }
  0x12   :  { %298 = vst [vmem:[%s899_s3 + $0x70] sm:$0xff] %v234_v9  ;;  %299 = vst [vmem:[%s899_s3 + $0x78] sm:$0xff] %v235_v12  ;;  %v173_v20 = vadd.f32 %v385_v2, %v102_v13  ;;  %v174_v21 = vadd.f32 %v385_v2, %v103_v14  ;;  %v175_v22 = vadd.f32 %v385_v2, %v104_v15  ;;  %v236_v25 = vmax.f32 %v172_v16, 0.0  ;;  %v52_v8 = vld [vmem:[%s896_s0 + $0x130] sm:$0xff]  ;;  %v53_v13 = vld [vmem:[%s896_s0 + $0x138] sm:$0xff] }
  0x13   :  { %v108_v23 = vmul.f32 %v380_v1, %v37_v11  ;;  %v176_v26 = vadd.f32 %v385_v2, %v105_v17  ;;  %v177_v27 = vadd.f32 %v385_v2, %v106_v18  ;;  %v178_v28 = vadd.f32 %v385_v2, %v107_v19 }
  0x14   :  { %v237_v32 = vmax.f32 %v173_v20, 0.0  ;;  %v238_v33 = vmax.f32 %v174_v21, 0.0  ;;  %v239_v34 = vmax.f32 %v175_v22, 0.0  ;;  %300 = vst [vmem:[%s899_s3 + $0x80] sm:$0xff] %v236_v25  ;;  %v109_v42 = vmul.f32 %v380_v1, %v38_v24 }
  0x15   :  { %v179_v35 = vadd.f32 %v385_v2, %v108_v23  ;;  %v240_v39 = vmax.f32 %v176_v26, 0.0  ;;  %v241_v40 = vmax.f32 %v177_v27, 0.0  ;;  %v242_v41 = vmax.f32 %v178_v28, 0.0  ;;  %v54_v26 = vld [vmem:[%s896_s0 + $0x140] sm:$0xff] }
  0x16   :  { %301 = vst [vmem:[%s899_s3 + $0x88] sm:$0xff] %v237_v32  ;;  %302 = vst [vmem:[%s899_s3 + $0x90] sm:$0xff] %v238_v33  ;;  %v110_v45 = vmul.f32 %v380_v1, %v39_v29  ;;  %v111_v46 = vmul.f32 %v380_v1, %v40_v30  ;;  %v112_v47 = vmul.f32 %v380_v1, %v41_v31  ;;  %v55_v31 = vld [vmem:[%s896_s0 + $0x148] sm:$0xff]  ;;  %v56_v32 = vld [vmem:[%s896_s0 + $0x150] sm:$0xff] }
  0x17   :  { %303 = vst [vmem:[%s899_s3 + $0x98] sm:$0xff] %v239_v34  ;;  %v243_v44 = vmax.f32 %v179_v35, 0.0  ;;  %304 = vst [vmem:[%s899_s3 + $0xa0] sm:$0xff] %v240_v39  ;;  %v180_v48 = vadd.f32 %v385_v2, %v109_v42  ;;  %v113_v49 = vmul.f32 %v380_v1, %v42_v36  ;;  %v114_v50 = vmul.f32 %v380_v1, %v43_v37  ;;  %v57_v33 = vld [vmem:[%s896_s0 + $0x158] sm:$0xff]  ;;  %v59_v39 = vld [vmem:[%s896_s0 + $0x168] sm:$0xff] }
  0x18   :  { %305 = vst [vmem:[%s899_s3 + $0xa8] sm:$0xff] %v241_v40  ;;  %306 = vst [vmem:[%s899_s3 + $0xb0] sm:$0xff] %v242_v41  ;;  %v115_v51 = vmul.f32 %v380_v1, %v44_v38  ;;  %v181_v52 = vadd.f32 %v385_v2, %v110_v45  ;;  %v182_v53 = vadd.f32 %v385_v2, %v111_v46  ;;  %v58_v38 = vld [vmem:[%s896_s0 + $0x160] sm:$0xff]  ;;  %v60_v40 = vld [vmem:[%s896_s0 + $0x170] sm:$0xff] }
  0x19   :  { %307 = vst [vmem:[%s899_s3 + $0xb8] sm:$0xff] %v243_v44  ;;  %v183_v54 = vadd.f32 %v385_v2, %v112_v47  ;;  %v116_v55 = vmul.f32 %v380_v1, %v45_v43  ;;  %v244_v57 = vmax.f32 %v180_v48, 0.0  ;;  %v184_v58 = vadd.f32 %v385_v2, %v113_v49  ;;  %v61_v45 = vld [vmem:[%s896_s0 + $0x178] sm:$0xff] }
  0x1a   :  { %v185_v59 = vadd.f32 %v385_v2, %v114_v50  ;;  %v186_v60 = vadd.f32 %v385_v2, %v115_v51  ;;  %v245_v0 = vmax.f32 %v181_v52, 0.0  ;;  %v246_v3 = vmax.f32 %v182_v53, 0.0 }
  0x1b   :  { %v247_v4 = vmax.f32 %v183_v54, 0.0  ;;  %v187_v5 = vadd.f32 %v385_v2, %v116_v55  ;;  %308 = vst [vmem:[%s899_s3 + $0xc0] sm:$0xff] %v244_v57  ;;  %v248_v9 = vmax.f32 %v184_v58, 0.0  ;;  %v117_v12 = vmul.f32 %v380_v1, %v46_v56  ;;  %v62_v58 = vld [vmem:[%s896_s0 + $0x180] sm:$0xff] }
  0x1c   :  { %v249_v10 = vmax.f32 %v185_v59, 0.0  ;;  %v250_v11 = vmax.f32 %v186_v60, 0.0  ;;  %309 = vst [vmem:[%s899_s3 + $0xc8] sm:$0xff] %v245_v0  ;;  %310 = vst [vmem:[%s899_s3 + $0xd0] sm:$0xff] %v246_v3  ;;  %v118_v15 = vmul.f32 %v380_v1, %v47_v61  ;;  %v119_v16 = vmul.f32 %v380_v1, %v48_v62  ;;  %v64_v0 = vld [vmem:[%s896_s0 + $0x190] sm:$0xff]  ;;  %v65_v3 = vld [vmem:[%s896_s0 + $0x198] sm:$0xff] }
  0x1d   :  { %311 = vst [vmem:[%s899_s3 + $0xd8] sm:$0xff] %v247_v4  ;;  %v251_v14 = vmax.f32 %v187_v5, 0.0  ;;  %v120_v17 = vmul.f32 %v380_v1, %v49_v63  ;;  %312 = vst [vmem:[%s899_s3 + $0xe0] sm:$0xff] %v248_v9  ;;  %v188_v18 = vadd.f32 %v385_v2, %v117_v12  ;;  %v121_v19 = vmul.f32 %v380_v1, %v50_v6  ;;  %v63_v63 = vld [vmem:[%s896_s0 + $0x188] sm:$0xff] }
  0x1e   :  { %313 = vst [vmem:[%s899_s3 + $0xe8] sm:$0xff] %v249_v10  ;;  %314 = vst [vmem:[%s899_s3 + $0xf0] sm:$0xff] %v250_v11  ;;  %v122_v20 = vmul.f32 %v380_v1, %v51_v7  ;;  %v123_v21 = vmul.f32 %v380_v1, %v52_v8  ;;  %v189_v22 = vadd.f32 %v385_v2, %v118_v15  ;;  %v66_v8 = vld [vmem:[%s896_s0 + $0x1a0] sm:$0xff]  ;;  %v67_v9 = vld [vmem:[%s896_s0 + $0x1a8] sm:$0xff] }
  0x1f   :  { %315 = vst [vmem:[%s899_s3 + $0xf8] sm:$0xff] %v251_v14  ;;  %v190_v23 = vadd.f32 %v385_v2, %v119_v16  ;;  %v191_v24 = vadd.f32 %v385_v2, %v120_v17  ;;  %v124_v25 = vmul.f32 %v380_v1, %v53_v13  ;;  %v252_v27 = vmax.f32 %v188_v18, 0.0  ;;  %v68_v10 = vld [vmem:[%s896_s0 + $0x1b0] sm:$0xff]  ;;  %v69_v15 = vld [vmem:[%s896_s0 + $0x1b8] sm:$0xff] }
  0x20   :  { %v192_v28 = vadd.f32 %v385_v2, %v121_v19  ;;  %v193_v29 = vadd.f32 %v385_v2, %v122_v20  ;;  %v194_v30 = vadd.f32 %v385_v2, %v123_v21  ;;  %v253_v34 = vmax.f32 %v189_v22, 0.0 }
  0x21   :  { %v254_v35 = vmax.f32 %v190_v23, 0.0  ;;  %v255_v36 = vmax.f32 %v191_v24, 0.0  ;;  %v195_v37 = vadd.f32 %v385_v2, %v124_v25  ;;  %316 = vst [vmem:[%s899_s3 + $0x100] sm:$0xff] %v252_v27  ;;  %v125_v44 = vmul.f32 %v380_v1, %v54_v26 }
  0x22   :  { %v256_v41 = vmax.f32 %v192_v28, 0.0  ;;  %v257_v42 = vmax.f32 %v193_v29, 0.0  ;;  %v258_v43 = vmax.f32 %v194_v30, 0.0  ;;  %317 = vst [vmem:[%s899_s3 + $0x108] sm:$0xff] %v253_v34  ;;  %v126_v47 = vmul.f32 %v380_v1, %v55_v31  ;;  %v70_v28 = vld [vmem:[%s896_s0 + $0x1c0] sm:$0xff]  ;;  %v72_v34 = vld [vmem:[%s896_s0 + $0x1d0] sm:$0xff] }
  0x23   :  { %318 = vst [vmem:[%s899_s3 + $0x110] sm:$0xff] %v254_v35  ;;  %319 = vst [vmem:[%s899_s3 + $0x118] sm:$0xff] %v255_v36  ;;  %v259_v46 = vmax.f32 %v195_v37, 0.0  ;;  %v127_v48 = vmul.f32 %v380_v1, %v56_v32  ;;  %v128_v49 = vmul.f32 %v380_v1, %v57_v33  ;;  %v196_v50 = vadd.f32 %v385_v2, %v125_v44  ;;  %v71_v33 = vld [vmem:[%s896_s0 + $0x1c8] sm:$0xff]  ;;  %v73_v35 = vld [vmem:[%s896_s0 + $0x1d8] sm:$0xff] }
  0x24   :  { %320 = vst [vmem:[%s899_s3 + $0x120] sm:$0xff] %v256_v41  ;;  %321 = vst [vmem:[%s899_s3 + $0x128] sm:$0xff] %v257_v42  ;;  %v129_v51 = vmul.f32 %v380_v1, %v58_v38  ;;  %v130_v52 = vmul.f32 %v380_v1, %v59_v39  ;;  %v131_v53 = vmul.f32 %v380_v1, %v60_v40  ;;  %v74_v40 = vld [vmem:[%s896_s0 + $0x1e0] sm:$0xff]  ;;  %v75_v41 = vld [vmem:[%s896_s0 + $0x1e8] sm:$0xff] }
  0x25   :  { %322 = vst [vmem:[%s899_s3 + $0x130] sm:$0xff] %v258_v43  ;;  %323 = vst [vmem:[%s899_s3 + $0x138] sm:$0xff] %v259_v46  ;;  %v197_v54 = vadd.f32 %v385_v2, %v126_v47  ;;  %v198_v55 = vadd.f32 %v385_v2, %v127_v48  ;;  %v199_v56 = vadd.f32 %v385_v2, %v128_v49  ;;  %v260_v59 = vmax.f32 %v196_v50, 0.0  ;;  %v76_v42 = vld [vmem:[%s896_s0 + $0x1f0] sm:$0xff]  ;;  %v77_v47 = vld [vmem:[%s896_s0 + $0x1f8] sm:$0xff] }
  0x26   :  { %v132_v57 = vmul.f32 %v380_v1, %v61_v45  ;;  %v200_v60 = vadd.f32 %v385_v2, %v129_v51  ;;  %v201_v61 = vadd.f32 %v385_v2, %v130_v52  ;;  %v202_v62 = vadd.f32 %v385_v2, %v131_v53 }
  0x27   :  { %v261_v4 = vmax.f32 %v197_v54, 0.0  ;;  %v262_v5 = vmax.f32 %v198_v55, 0.0  ;;  %v263_v6 = vmax.f32 %v199_v56, 0.0  ;;  %324 = vst [vmem:[%s899_s3 + $0x140] sm:$0xff] %v260_v59  ;;  %v133_v14 = vmul.f32 %v380_v1, %v62_v58 }
  0x28   :  { %v203_v7 = vadd.f32 %v385_v2, %v132_v57  ;;  %v264_v11 = vmax.f32 %v200_v60, 0.0  ;;  %v265_v12 = vmax.f32 %v201_v61, 0.0  ;;  %v266_v13 = vmax.f32 %v202_v62, 0.0 }
  0x29   :  { %325 = vst [vmem:[%s899_s3 + $0x148] sm:$0xff] %v261_v4  ;;  %326 = vst [vmem:[%s899_s3 + $0x150] sm:$0xff] %v262_v5  ;;  %v134_v17 = vmul.f32 %v380_v1, %v63_v63  ;;  %v135_v18 = vmul.f32 %v380_v1, %v64_v0  ;;  %v136_v19 = vmul.f32 %v380_v1, %v65_v3 }
  0x2a   :  { %327 = vst [vmem:[%s899_s3 + $0x158] sm:$0xff] %v263_v6  ;;  %v267_v16 = vmax.f32 %v203_v7, 0.0  ;;  %328 = vst [vmem:[%s899_s3 + $0x160] sm:$0xff] %v264_v11  ;;  %v204_v20 = vadd.f32 %v385_v2, %v133_v14  ;;  %v137_v21 = vmul.f32 %v380_v1, %v66_v8  ;;  %v138_v22 = vmul.f32 %v380_v1, %v67_v9 }
  0x2b   :  { %329 = vst [vmem:[%s899_s3 + $0x168] sm:$0xff] %v265_v12  ;;  %330 = vst [vmem:[%s899_s3 + $0x170] sm:$0xff] %v266_v13  ;;  %v139_v23 = vmul.f32 %v380_v1, %v68_v10  ;;  %v205_v24 = vadd.f32 %v385_v2, %v134_v17  ;;  %v206_v25 = vadd.f32 %v385_v2, %v135_v18 }
  0x2c   :  { %331 = vst [vmem:[%s899_s3 + $0x178] sm:$0xff] %v267_v16  ;;  %v207_v26 = vadd.f32 %v385_v2, %v136_v19  ;;  %v140_v27 = vmul.f32 %v380_v1, %v69_v15  ;;  %v268_v29 = vmax.f32 %v204_v20, 0.0  ;;  %v208_v30 = vadd.f32 %v385_v2, %v137_v21 }
  0x2d   :  { %v209_v31 = vadd.f32 %v385_v2, %v138_v22  ;;  %v210_v32 = vadd.f32 %v385_v2, %v139_v23  ;;  %v269_v36 = vmax.f32 %v205_v24, 0.0  ;;  %v270_v37 = vmax.f32 %v206_v25, 0.0 }
  0x2e   :  { %v271_v38 = vmax.f32 %v207_v26, 0.0  ;;  %v211_v39 = vadd.f32 %v385_v2, %v140_v27  ;;  %332 = vst [vmem:[%s899_s3 + $0x180] sm:$0xff] %v268_v29  ;;  %v272_v43 = vmax.f32 %v208_v30, 0.0  ;;  %v141_v46 = vmul.f32 %v380_v1, %v70_v28 }
  0x2f   :  { %v273_v44 = vmax.f32 %v209_v31, 0.0  ;;  %v274_v45 = vmax.f32 %v210_v32, 0.0  ;;  %333 = vst [vmem:[%s899_s3 + $0x188] sm:$0xff] %v269_v36  ;;  %334 = vst [vmem:[%s899_s3 + $0x190] sm:$0xff] %v270_v37  ;;  %v142_v49 = vmul.f32 %v380_v1, %v71_v33  ;;  %v143_v50 = vmul.f32 %v380_v1, %v72_v34 }
  0x30   :  { %335 = vst [vmem:[%s899_s3 + $0x198] sm:$0xff] %v271_v38  ;;  %v275_v48 = vmax.f32 %v211_v39, 0.0  ;;  %v144_v51 = vmul.f32 %v380_v1, %v73_v35  ;;  %336 = vst [vmem:[%s899_s3 + $0x1a0] sm:$0xff] %v272_v43  ;;  %v212_v52 = vadd.f32 %v385_v2, %v141_v46  ;;  %v145_v53 = vmul.f32 %v380_v1, %v74_v40 }
  0x31   :  { %337 = vst [vmem:[%s899_s3 + $0x1a8] sm:$0xff] %v273_v44  ;;  %338 = vst [vmem:[%s899_s3 + $0x1b0] sm:$0xff] %v274_v45  ;;  %v146_v54 = vmul.f32 %v380_v1, %v75_v41  ;;  %v147_v55 = vmul.f32 %v380_v1, %v76_v42  ;;  %v213_v56 = vadd.f32 %v385_v2, %v142_v49 }
  0x32   :  { %339 = vst [vmem:[%s899_s3 + $0x1b8] sm:$0xff] %v275_v48  ;;  %v214_v57 = vadd.f32 %v385_v2, %v143_v50  ;;  %v215_v58 = vadd.f32 %v385_v2, %v144_v51  ;;  %v148_v59 = vmul.f32 %v380_v1, %v77_v47  ;;  %v276_v60 = vmax.f32 %v212_v52, 0.0 }
  0x33   :  { %v216_v61 = vadd.f32 %v385_v2, %v145_v53  ;;  %v217_v62 = vadd.f32 %v385_v2, %v146_v54  ;;  %v218_v63 = vadd.f32 %v385_v2, %v147_v55  ;;  %v277_v0 = vmax.f32 %v213_v56, 0.0 }
  0x34   :  { %v278_v3 = vmax.f32 %v214_v57, 0.0  ;;  %v279_v4 = vmax.f32 %v215_v58, 0.0  ;;  %v219_v5 = vadd.f32 %v385_v2, %v148_v59  ;;  %340 = vst [vmem:[%s899_s3 + $0x1c0] sm:$0xff] %v276_v60 }
  0x35   :  { %v280_v6 = vmax.f32 %v216_v61, 0.0  ;;  %v281_v7 = vmax.f32 %v217_v62, 0.0  ;;  %v282_v8 = vmax.f32 %v218_v63, 0.0  ;;  %341 = vst [vmem:[%s899_s3 + $0x1c8] sm:$0xff] %v277_v0 }
  0x36   :  { %342 = vst [vmem:[%s899_s3 + $0x1d0] sm:$0xff] %v278_v3  ;;  %343 = vst [vmem:[%s899_s3 + $0x1d8] sm:$0xff] %v279_v4  ;;  %v283_v1 = vmax.f32 %v219_v5, 0.0 }
  0x37   :  { %344 = vst [vmem:[%s899_s3 + $0x1e0] sm:$0xff] %v280_v6  ;;  %345 = vst [vmem:[%s899_s3 + $0x1e8] sm:$0xff] %v281_v7 }
  0x38   :  { %346 = vst [vmem:[%s899_s3 + $0x1f0] sm:$0xff] %v282_v8  ;;  %347 = vst [vmem:[%s899_s3 + $0x1f8] sm:$0xff] %v283_v1 }

// kernel: basic_conv3d.2
= control target key start
LH: loop header
LB: loop body
LE: loop exit
PB: predicated region body
PF: predicated region fallthrough
CT: control target
= control target key end

     0   :  { %s1694_s1 = inlined_call_operand.vmem [shape: f32[128,128], index: 1, kind: input, shape index: {}]   ;;  %s1695_s0 = inlined_call_operand.vmem [shape: f32[512,128], index: 0, kind: input, shape index: {}]   ;;  %s1696_s3 = inlined_call_operand.vmem [shape: f32[1,128], index: 3, kind: output, shape index: {1}]   ;;  %s1697_s4 = inlined_call_operand.vmem [shape: f32[1,128], index: 4, kind: output, shape index: {2}]   ;;  %s1698_s2 = inlined_call_operand.vmem [shape: f32[512,128], index: 2, kind: output, shape index: {0}]  }
   0x1   :  { %v84_v0 = vld [vmem:[%s1694_s1] sm:$0xff]  ;;  %v85_v1 = vld [vmem:[%s1694_s1 + $0x8] sm:$0xff]  ;;  %v86_v2 = vld [vmem:[%s1694_s1 + $0x10] sm:$0xff] }
   0x2   :  { %v977_v3 = vpack.c.bf16 %v85_v1, %v84_v0  ;;  %v87_v4 = vld [vmem:[%s1694_s1 + $0x18] sm:$0xff]  ;;  %v88_v6 = vld [vmem:[%s1694_s1 + $0x20] sm:$0xff]  ;;  %v89_v7 = vld [vmem:[%s1694_s1 + $0x28] sm:$0xff] }
   0x3   :  { %v981_v5 = vpack.c.bf16 %v87_v4, %v86_v2  ;;  %v985_v8 = vpack.c.bf16 %v89_v7, %v88_v6  ;;  %v20_v9 = vld [vmem:[%s1695_s0] sm:$0xff]  ;;  %v90_v10 = vld [vmem:[%s1694_s1 + $0x30] sm:$0xff]  ;;  %v91_v11 = vld [vmem:[%s1694_s1 + $0x38] sm:$0xff] }
   0x4   :  { %978 = vmatprep.subr.bf16.mxu0 %v977_v3  ;;  %1009 = vmatprep.subr.bf16.mxu1 %v977_v3  ;;  %v989_v12 = vpack.c.bf16 %v91_v11, %v90_v10  ;;  %v92_v13 = vld [vmem:[%s1694_s1 + $0x40] sm:$0xff]  ;;  %v93_v14 = vld [vmem:[%s1694_s1 + $0x48] sm:$0xff]  ;;  %v94_v16 = vld [vmem:[%s1694_s1 + $0x50] sm:$0xff] }
   0x5   :  { %980 = vmatpush3.bf16.msra.mxu0 %v977_v3  ;;  %1017 = vmatpush3.bf16.msra.mxu1 %v977_v3  ;;  %v993_v15 = vpack.c.bf16 %v93_v14, %v92_v13  ;;  %v95_v17 = vld [vmem:[%s1694_s1 + $0x58] sm:$0xff]  ;;  %v52_v18 = vld [vmem:[%s1695_s0 + $0x100] sm:$0xff]  ;;  %v97_v21 = vld [vmem:[%s1694_s1 + $0x68] sm:$0xff] }
   0x6   :  { %982 = vmatprep.subr.bf16.mxu0 %v981_v5  ;;  %1010 = vmatprep.subr.bf16.mxu1 %v981_v5  ;;  %v997_v19 = vpack.c.bf16 %v95_v17, %v94_v16  ;;  %v96_v20 = vld [vmem:[%s1694_s1 + $0x60] sm:$0xff]  ;;  %v98_v23 = vld [vmem:[%s1694_s1 + $0x70] sm:$0xff]  ;;  %v99_v24 = vld [vmem:[%s1694_s1 + $0x78] sm:$0xff] }
   0x7   :  { %881 = vmatprep.mubr.f32.mxu0 %v20_v9  ;;  %929 = vmatprep.mubr.f32.mxu1 %v52_v18  ;;  %v1001_v22 = vpack.c.bf16 %v97_v21, %v96_v20  ;;  %v1005_v25 = vpack.c.bf16 %v99_v24, %v98_v23  ;;  %v21_v26 = vld [vmem:[%s1695_s0 + $0x8] sm:$0xff]  ;;  %v22_v28 = vld [vmem:[%s1695_s0 + $0x10] sm:$0xff]  ;;  %v23_v30 = vld [vmem:[%s1695_s0 + $0x18] sm:$0xff]  ;;  %v1026_v24 = vmov 0.0  }
   0x8   :  { %v53_v27 = vld [vmem:[%s1695_s0 + $0x108] sm:$0xff]  ;;  %v54_v29 = vld [vmem:[%s1695_s0 + $0x110] sm:$0xff]  ;;  %v55_v31 = vld [vmem:[%s1695_s0 + $0x118] sm:$0xff]  ;;  %18 = vst [vmem:[%s1696_s3] sm:$0x1] %v1026_v24 }
   0x9   :  { %984 = vmatpush3.bf16.msra.mxu0 %v981_v5  ;;  %1018 = vmatpush3.bf16.msra.mxu1 %v981_v5  ;;  %v24_v32 = vld [vmem:[%s1695_s0 + $0x20] sm:$0xff]  ;;  %v25_v34 = vld [vmem:[%s1695_s0 + $0x28] sm:$0xff]  ;;  %v26_v36 = vld [vmem:[%s1695_s0 + $0x30] sm:$0xff]  ;;  %19 = vst [vmem:[%s1697_s4] sm:$0x1] %v1026_v24 }
   0xa   :  { %986 = vmatprep.subr.bf16.mxu0 %v985_v8  ;;  %1011 = vmatprep.subr.bf16.mxu1 %v985_v8  ;;  %v56_v33 = vld [vmem:[%s1695_s0 + $0x120] sm:$0xff]  ;;  %v57_v35 = vld [vmem:[%s1695_s0 + $0x128] sm:$0xff]  ;;  %v58_v37 = vld [vmem:[%s1695_s0 + $0x130] sm:$0xff] }
   0xb   :  { %v27_v38 = vld [vmem:[%s1695_s0 + $0x38] sm:$0xff]  ;;  %v28_v40 = vld [vmem:[%s1695_s0 + $0x40] sm:$0xff]  ;;  %v29_v42 = vld [vmem:[%s1695_s0 + $0x48] sm:$0xff] }
   0xc   :  { %v59_v39 = vld [vmem:[%s1695_s0 + $0x138] sm:$0xff]  ;;  %v60_v41 = vld [vmem:[%s1695_s0 + $0x140] sm:$0xff]  ;;  %v61_v43 = vld [vmem:[%s1695_s0 + $0x148] sm:$0xff] }
   0xd   :  { %988 = vmatpush3.bf16.msra.mxu0 %v985_v8  ;;  %1019 = vmatpush3.bf16.msra.mxu1 %v985_v8  ;;  %v30_v44 = vld [vmem:[%s1695_s0 + $0x50] sm:$0xff]  ;;  %v31_v46 = vld [vmem:[%s1695_s0 + $0x58] sm:$0xff]  ;;  %v32_v48 = vld [vmem:[%s1695_s0 + $0x60] sm:$0xff] }
   0xe   :  { %990 = vmatprep.subr.bf16.mxu0 %v989_v12  ;;  %1012 = vmatprep.subr.bf16.mxu1 %v989_v12  ;;  %v62_v45 = vld [vmem:[%s1695_s0 + $0x150] sm:$0xff]  ;;  %v63_v47 = vld [vmem:[%s1695_s0 + $0x158] sm:$0xff]  ;;  %v64_v49 = vld [vmem:[%s1695_s0 + $0x160] sm:$0xff] }
   0xf   :  { %v33_v50 = vld [vmem:[%s1695_s0 + $0x68] sm:$0xff]  ;;  %v34_v52 = vld [vmem:[%s1695_s0 + $0x70] sm:$0xff]  ;;  %v35_v54 = vld [vmem:[%s1695_s0 + $0x78] sm:$0xff] }
  0x10   :  { %v65_v51 = vld [vmem:[%s1695_s0 + $0x168] sm:$0xff]  ;;  %v66_v53 = vld [vmem:[%s1695_s0 + $0x170] sm:$0xff]  ;;  %v67_v55 = vld [vmem:[%s1695_s0 + $0x178] sm:$0xff] }
  0x11   :  { %992 = vmatpush3.bf16.msra.mxu0 %v989_v12  ;;  %1020 = vmatpush3.bf16.msra.mxu1 %v989_v12  ;;  %v36_v56 = vld [vmem:[%s1695_s0 + $0x80] sm:$0xff]  ;;  %v37_v58 = vld [vmem:[%s1695_s0 + $0x88] sm:$0xff]  ;;  %v38_v60 = vld [vmem:[%s1695_s0 + $0x90] sm:$0xff] }
  0x12   :  { %994 = vmatprep.subr.bf16.mxu0 %v993_v15  ;;  %1013 = vmatprep.subr.bf16.mxu1 %v993_v15  ;;  %v68_v57 = vld [vmem:[%s1695_s0 + $0x180] sm:$0xff]  ;;  %v69_v59 = vld [vmem:[%s1695_s0 + $0x188] sm:$0xff]  ;;  %v70_v61 = vld [vmem:[%s1695_s0 + $0x190] sm:$0xff] }
  0x13   :  { %v39_v62 = vld [vmem:[%s1695_s0 + $0x98] sm:$0xff]  ;;  %v40_v0 = vld [vmem:[%s1695_s0 + $0xa0] sm:$0xff]  ;;  %v41_v2 = vld [vmem:[%s1695_s0 + $0xa8] sm:$0xff] }
  0x14   :  { %v71_v63 = vld [vmem:[%s1695_s0 + $0x198] sm:$0xff]  ;;  %v72_v1 = vld [vmem:[%s1695_s0 + $0x1a0] sm:$0xff]  ;;  %v73_v3 = vld [vmem:[%s1695_s0 + $0x1a8] sm:$0xff] }
  0x15   :  { %996 = vmatpush3.bf16.msra.mxu0 %v993_v15  ;;  %1021 = vmatpush3.bf16.msra.mxu1 %v993_v15  ;;  %v42_v4 = vld [vmem:[%s1695_s0 + $0xb0] sm:$0xff]  ;;  %v43_v6 = vld [vmem:[%s1695_s0 + $0xb8] sm:$0xff]  ;;  %v44_v8 = vld [vmem:[%s1695_s0 + $0xc0] sm:$0xff] }
  0x16   :  { %998 = vmatprep.subr.bf16.mxu0 %v997_v19  ;;  %1014 = vmatprep.subr.bf16.mxu1 %v997_v19  ;;  %v74_v5 = vld [vmem:[%s1695_s0 + $0x1b0] sm:$0xff]  ;;  %v75_v7 = vld [vmem:[%s1695_s0 + $0x1b8] sm:$0xff]  ;;  %v76_v9 = vld [vmem:[%s1695_s0 + $0x1c0] sm:$0xff] }
  0x17   :  { %v45_v10 = vld [vmem:[%s1695_s0 + $0xc8] sm:$0xff]  ;;  %v46_v12 = vld [vmem:[%s1695_s0 + $0xd0] sm:$0xff]  ;;  %v47_v14 = vld [vmem:[%s1695_s0 + $0xd8] sm:$0xff] }
  0x18   :  { %v77_v11 = vld [vmem:[%s1695_s0 + $0x1c8] sm:$0xff]  ;;  %v78_v13 = vld [vmem:[%s1695_s0 + $0x1d0] sm:$0xff]  ;;  %v79_v15 = vld [vmem:[%s1695_s0 + $0x1d8] sm:$0xff] }
  0x19   :  { %1000 = vmatpush3.bf16.msra.mxu0 %v997_v19  ;;  %1022 = vmatpush3.bf16.msra.mxu1 %v997_v19  ;;  %v48_v16 = vld [vmem:[%s1695_s0 + $0xe0] sm:$0xff]  ;;  %v49_v18 = vld [vmem:[%s1695_s0 + $0xe8] sm:$0xff]  ;;  %v50_v20 = vld [vmem:[%s1695_s0 + $0xf0] sm:$0xff] }
  0x1a   :  { %1002 = vmatprep.subr.bf16.mxu0 %v1001_v22  ;;  %1015 = vmatprep.subr.bf16.mxu1 %v1001_v22  ;;  %v80_v17 = vld [vmem:[%s1695_s0 + $0x1e0] sm:$0xff]  ;;  %v81_v19 = vld [vmem:[%s1695_s0 + $0x1e8] sm:$0xff]  ;;  %v82_v21 = vld [vmem:[%s1695_s0 + $0x1f0] sm:$0xff] }
  0x1b   :  { %v83_v23 = vld [vmem:[%s1695_s0 + $0x1f8] sm:$0xff] }
  0x1d   :  { %1004 = vmatpush3.bf16.msra.mxu0 %v1001_v22  ;;  %1023 = vmatpush3.bf16.msra.mxu1 %v1001_v22  ;;  %v51_v22 = vld [vmem:[%s1695_s0 + $0xf8] sm:$0xff] }
  0x1e   :  { %1006 = vmatprep.subr.bf16.mxu0 %v1005_v25  ;;  %1016 = vmatprep.subr.bf16.mxu1 %v1005_v25 }
  0x21   :  { %1008 = vmatpush3.bf16.msra.mxu0 %v1005_v25  ;;  %1024 = vmatpush3.bf16.msra.mxu1 %v1005_v25 }
  0x24   :  { %882 = vmatmul.mubr.f32.vlgmr.msra.gmra.mrb[0].mxu0 %v21_v26  ;;  %930 = vmatmul.mubr.f32.vlgmr.msra.gmra.mrb[0].mxu1 %v53_v27 }
  0x25   :  { %884 = vmatprep.mubr.f32.mxu0 %v22_v28  ;;  %932 = vmatprep.mubr.f32.mxu1 %v54_v29 }
  0x28   :  { %885 = vmatmul.mubr.f32.gmra.mrb[2].mxu0 %v23_v30  ;;  %933 = vmatmul.mubr.f32.gmra.mrb[2].mxu1 %v55_v31 }
  0x29   :  { %887 = vmatprep.mubr.f32.mxu0 %v24_v32  ;;  %935 = vmatprep.mubr.f32.mxu1 %v56_v33 }
  0x2c   :  { %888 = vmatmul.mubr.f32.gmra.mrb[4].mxu0 %v25_v34  ;;  %936 = vmatmul.mubr.f32.gmra.mrb[4].mxu1 %v57_v35 }
  0x2d   :  { %890 = vmatprep.mubr.f32.mxu0 %v26_v36  ;;  %938 = vmatprep.mubr.f32.mxu1 %v58_v37 }
  0x30   :  { %891 = vmatmul.mubr.f32.gmra.mrb[6].mxu0 %v27_v38  ;;  %939 = vmatmul.mubr.f32.gmra.mrb[6].mxu1 %v59_v39 }
  0x31   :  { %893 = vmatprep.mubr.f32.mxu0 %v28_v40  ;;  %941 = vmatprep.mubr.f32.mxu1 %v60_v41 }
  0x34   :  { %894 = vmatmul.mubr.f32.gmra.mrb[8].mxu0 %v29_v42  ;;  %942 = vmatmul.mubr.f32.gmra.mrb[8].mxu1 %v61_v43 }
  0x35   :  { %896 = vmatprep.mubr.f32.mxu0 %v30_v44  ;;  %944 = vmatprep.mubr.f32.mxu1 %v62_v45 }
  0x38   :  { %897 = vmatmul.mubr.f32.gmra.mrb[10].mxu0 %v31_v46  ;;  %945 = vmatmul.mubr.f32.gmra.mrb[10].mxu1 %v63_v47 }
  0x39   :  { %899 = vmatprep.mubr.f32.mxu0 %v32_v48  ;;  %947 = vmatprep.mubr.f32.mxu1 %v64_v49 }
  0x3c   :  { %900 = vmatmul.mubr.f32.gmra.mrb[12].mxu0 %v33_v50  ;;  %948 = vmatmul.mubr.f32.gmra.mrb[12].mxu1 %v65_v51 }
  0x3d   :  { %902 = vmatprep.mubr.f32.mxu0 %v34_v52  ;;  %950 = vmatprep.mubr.f32.mxu1 %v66_v53 }
  0x40   :  { %903 = vmatmul.mubr.f32.gmra.mrb[14].mxu0 %v35_v54  ;;  %951 = vmatmul.mubr.f32.gmra.mrb[14].mxu1 %v67_v55 }
  0x41   :  { %905 = vmatprep.mubr.f32.mxu0 %v36_v56  ;;  %953 = vmatprep.mubr.f32.mxu1 %v68_v57 }
  0x44   :  { %906 = vmatmul.mubr.f32.gmra.mrb[16].mxu0 %v37_v58  ;;  %954 = vmatmul.mubr.f32.gmra.mrb[16].mxu1 %v69_v59 }
  0x45   :  { %908 = vmatprep.mubr.f32.mxu0 %v38_v60  ;;  %956 = vmatprep.mubr.f32.mxu1 %v70_v61 }
  0x48   :  { %909 = vmatmul.mubr.f32.gmra.mrb[18].mxu0 %v39_v62  ;;  %957 = vmatmul.mubr.f32.gmra.mrb[18].mxu1 %v71_v63 }
  0x49   :  { %911 = vmatprep.mubr.f32.mxu0 %v40_v0  ;;  %959 = vmatprep.mubr.f32.mxu1 %v72_v1 }
  0x4c   :  { %912 = vmatmul.mubr.f32.gmra.mrb[20].mxu0 %v41_v2  ;;  %960 = vmatmul.mubr.f32.gmra.mrb[20].mxu1 %v73_v3 }
  0x4d   :  { %914 = vmatprep.mubr.f32.mxu0 %v42_v4  ;;  %962 = vmatprep.mubr.f32.mxu1 %v74_v5 }
  0x50   :  { %915 = vmatmul.mubr.f32.gmra.mrb[22].mxu0 %v43_v6  ;;  %963 = vmatmul.mubr.f32.gmra.mrb[22].mxu1 %v75_v7 }
  0x51   :  { %917 = vmatprep.mubr.f32.mxu0 %v44_v8  ;;  %965 = vmatprep.mubr.f32.mxu1 %v76_v9 }
  0x54   :  { %918 = vmatmul.mubr.f32.gmra.mrb[24].mxu0 %v45_v10  ;;  %966 = vmatmul.mubr.f32.gmra.mrb[24].mxu1 %v77_v11 }
  0x55   :  { %920 = vmatprep.mubr.f32.mxu0 %v46_v12  ;;  %968 = vmatprep.mubr.f32.mxu1 %v78_v13 }
  0x58   :  { %921 = vmatmul.mubr.f32.gmra.mrb[26].mxu0 %v47_v14  ;;  %969 = vmatmul.mubr.f32.gmra.mrb[26].mxu1 %v79_v15 }
  0x59   :  { %923 = vmatprep.mubr.f32.mxu0 %v48_v16  ;;  %971 = vmatprep.mubr.f32.mxu1 %v80_v17 }
  0x5c   :  { %924 = vmatmul.mubr.f32.gmra.mrb[28].mxu0 %v49_v18  ;;  %972 = vmatmul.mubr.f32.gmra.mrb[28].mxu1 %v81_v19 }
  0x5d   :  { %926 = vmatprep.mubr.f32.mxu0 %v50_v20  ;;  %974 = vmatprep.mubr.f32.mxu1 %v82_v21 }
  0x60   :  { %927 = vmatmul.mubr.f32.gmra.mrb[30].mxu0 %v51_v22  ;;  %975 = vmatmul.mubr.f32.gmra.mrb[30].mxu1 %v83_v23 }
  0xf7   :  { %v883_v25 = vpop.f32.mrb[0].mxu0  ;;  %v1298_v26 = vpop.f32.mrb[0].mxu1 }
  0xf8   :  { %486 = vst [vmem:[%s1698_s2 + $0x8] sm:$0xff] %v883_v25  ;;  %v623_v27 = vmul.f32 %v883_v25, %v883_v25  ;;  %v166_v28 = vpop.f32.mrb[1].mxu0  ;;  %518 = vst [vmem:[%s1698_s2 + $0x108] sm:$0xff] %v1298_v26  ;;  %v1307_v29 = vpop.f32.mrb[1].mxu1 }
  0xf9   :  { %485 = vst [vmem:[%s1698_s2] sm:$0xff] %v166_v28  ;;  %v550_v30 = vadd.f32 %v883_v25, %v166_v28  ;;  %v622_v31 = vmul.f32 %v166_v28, %v166_v28  ;;  %517 = vst [vmem:[%s1698_s2 + $0x100] sm:$0xff] %v1307_v29 }
  0xfb   :  { %v686_v32 = vadd.f32 %v623_v27, %v622_v31  ;;  %v886_v33 = vpop.f32.mrb[2].mxu0  ;;  %v1316_v34 = vpop.f32.mrb[2].mxu1 }
  0xfc   :  { %488 = vst [vmem:[%s1698_s2 + $0x18] sm:$0xff] %v886_v33  ;;  %v176_v35 = vpop.f32.mrb[3].mxu0  ;;  %520 = vst [vmem:[%s1698_s2 + $0x118] sm:$0xff] %v1316_v34  ;;  %v1325_v36 = vpop.f32.mrb[3].mxu1  ;;  %v625_v39 = vmul.f32 %v886_v33, %v886_v33 }
  0xfd   :  { %487 = vst [vmem:[%s1698_s2 + $0x10] sm:$0xff] %v176_v35  ;;  %v551_v37 = vadd.f32 %v550_v30, %v176_v35  ;;  %v624_v38 = vmul.f32 %v176_v35, %v176_v35  ;;  %519 = vst [vmem:[%s1698_s2 + $0x110] sm:$0xff] %v1325_v36 }
  0xff   :  { %v687_v40 = vadd.f32 %v686_v32, %v624_v38  ;;  %v889_v41 = vpop.f32.mrb[4].mxu0  ;;  %v552_v42 = vadd.f32 %v886_v33, %v551_v37  ;;  %v1334_v43 = vpop.f32.mrb[4].mxu1 }
 0x100   :  { %490 = vst [vmem:[%s1698_s2 + $0x28] sm:$0xff] %v889_v41  ;;  %v186_v44 = vpop.f32.mrb[5].mxu0  ;;  %522 = vst [vmem:[%s1698_s2 + $0x128] sm:$0xff] %v1334_v43  ;;  %v1343_v45 = vpop.f32.mrb[5].mxu1  ;;  %v627_v49 = vmul.f32 %v889_v41, %v889_v41 }
 0x101   :  { %489 = vst [vmem:[%s1698_s2 + $0x20] sm:$0xff] %v186_v44  ;;  %v553_v46 = vadd.f32 %v552_v42, %v186_v44  ;;  %v626_v47 = vmul.f32 %v186_v44, %v186_v44  ;;  %v688_v48 = vadd.f32 %v687_v40, %v625_v39  ;;  %521 = vst [vmem:[%s1698_s2 + $0x120] sm:$0xff] %v1343_v45 }
 0x103   :  { %v689_v50 = vadd.f32 %v688_v48, %v626_v47  ;;  %v892_v51 = vpop.f32.mrb[6].mxu0  ;;  %v554_v52 = vadd.f32 %v889_v41, %v553_v46  ;;  %v1352_v53 = vpop.f32.mrb[6].mxu1 }
 0x104   :  { %492 = vst [vmem:[%s1698_s2 + $0x38] sm:$0xff] %v892_v51  ;;  %v196_v54 = vpop.f32.mrb[7].mxu0  ;;  %524 = vst [vmem:[%s1698_s2 + $0x138] sm:$0xff] %v1352_v53  ;;  %v1361_v55 = vpop.f32.mrb[7].mxu1  ;;  %v629_v59 = vmul.f32 %v892_v51, %v892_v51 }
 0x105   :  { %491 = vst [vmem:[%s1698_s2 + $0x30] sm:$0xff] %v196_v54  ;;  %v555_v56 = vadd.f32 %v554_v52, %v196_v54  ;;  %v628_v57 = vmul.f32 %v196_v54, %v196_v54  ;;  %v690_v58 = vadd.f32 %v689_v50, %v627_v49  ;;  %523 = vst [vmem:[%s1698_s2 + $0x130] sm:$0xff] %v1361_v55 }
 0x107   :  { %v691_v60 = vadd.f32 %v690_v58, %v628_v57  ;;  %v895_v61 = vpop.f32.mrb[8].mxu0  ;;  %v556_v62 = vadd.f32 %v892_v51, %v555_v56  ;;  %v1370_v63 = vpop.f32.mrb[8].mxu1 }
 0x108   :  { %494 = vst [vmem:[%s1698_s2 + $0x48] sm:$0xff] %v895_v61  ;;  %v206_v0 = vpop.f32.mrb[9].mxu0  ;;  %526 = vst [vmem:[%s1698_s2 + $0x148] sm:$0xff] %v1370_v63  ;;  %v1379_v1 = vpop.f32.mrb[9].mxu1  ;;  %v631_v5 = vmul.f32 %v895_v61, %v895_v61 }
 0x109   :  { %493 = vst [vmem:[%s1698_s2 + $0x40] sm:$0xff] %v206_v0  ;;  %v557_v2 = vadd.f32 %v556_v62, %v206_v0  ;;  %v630_v3 = vmul.f32 %v206_v0, %v206_v0  ;;  %v692_v4 = vadd.f32 %v691_v60, %v629_v59  ;;  %525 = vst [vmem:[%s1698_s2 + $0x140] sm:$0xff] %v1379_v1 }
 0x10b   :  { %v693_v6 = vadd.f32 %v692_v4, %v630_v3  ;;  %v898_v7 = vpop.f32.mrb[10].mxu0  ;;  %v558_v8 = vadd.f32 %v895_v61, %v557_v2  ;;  %v1388_v9 = vpop.f32.mrb[10].mxu1 }
 0x10c   :  { %496 = vst [vmem:[%s1698_s2 + $0x58] sm:$0xff] %v898_v7  ;;  %v216_v10 = vpop.f32.mrb[11].mxu0  ;;  %528 = vst [vmem:[%s1698_s2 + $0x158] sm:$0xff] %v1388_v9  ;;  %v1397_v11 = vpop.f32.mrb[11].mxu1  ;;  %v633_v15 = vmul.f32 %v898_v7, %v898_v7 }
 0x10d   :  { %495 = vst [vmem:[%s1698_s2 + $0x50] sm:$0xff] %v216_v10  ;;  %v559_v12 = vadd.f32 %v558_v8, %v216_v10  ;;  %v632_v13 = vmul.f32 %v216_v10, %v216_v10  ;;  %v694_v14 = vadd.f32 %v693_v6, %v631_v5  ;;  %527 = vst [vmem:[%s1698_s2 + $0x150] sm:$0xff] %v1397_v11 }
 0x10f   :  { %v695_v16 = vadd.f32 %v694_v14, %v632_v13  ;;  %v901_v17 = vpop.f32.mrb[12].mxu0  ;;  %v560_v18 = vadd.f32 %v898_v7, %v559_v12  ;;  %v1406_v19 = vpop.f32.mrb[12].mxu1 }
 0x110   :  { %498 = vst [vmem:[%s1698_s2 + $0x68] sm:$0xff] %v901_v17  ;;  %v226_v20 = vpop.f32.mrb[13].mxu0  ;;  %530 = vst [vmem:[%s1698_s2 + $0x168] sm:$0xff] %v1406_v19  ;;  %v1415_v21 = vpop.f32.mrb[13].mxu1  ;;  %v635_v25 = vmul.f32 %v901_v17, %v901_v17 }
 0x111   :  { %497 = vst [vmem:[%s1698_s2 + $0x60] sm:$0xff] %v226_v20  ;;  %v561_v22 = vadd.f32 %v560_v18, %v226_v20  ;;  %v634_v23 = vmul.f32 %v226_v20, %v226_v20  ;;  %v696_v24 = vadd.f32 %v695_v16, %v633_v15  ;;  %529 = vst [vmem:[%s1698_s2 + $0x160] sm:$0xff] %v1415_v21 }
 0x113   :  { %v697_v27 = vadd.f32 %v696_v24, %v634_v23  ;;  %v904_v28 = vpop.f32.mrb[14].mxu0  ;;  %v562_v30 = vadd.f32 %v901_v17, %v561_v22  ;;  %v1424_v31 = vpop.f32.mrb[14].mxu1 }
 0x114   :  { %500 = vst [vmem:[%s1698_s2 + $0x78] sm:$0xff] %v904_v28  ;;  %v236_v32 = vpop.f32.mrb[15].mxu0  ;;  %532 = vst [vmem:[%s1698_s2 + $0x178] sm:$0xff] %v1424_v31  ;;  %v1433_v33 = vpop.f32.mrb[15].mxu1  ;;  %v637_v39 = vmul.f32 %v904_v28, %v904_v28 }
 0x115   :  { %499 = vst [vmem:[%s1698_s2 + $0x70] sm:$0xff] %v236_v32  ;;  %v563_v35 = vadd.f32 %v562_v30, %v236_v32  ;;  %v636_v37 = vmul.f32 %v236_v32, %v236_v32  ;;  %v698_v38 = vadd.f32 %v697_v27, %v635_v25  ;;  %531 = vst [vmem:[%s1698_s2 + $0x170] sm:$0xff] %v1433_v33 }
 0x117   :  { %v699_v40 = vadd.f32 %v698_v38, %v636_v37  ;;  %v907_v41 = vpop.f32.mrb[16].mxu0  ;;  %v564_v42 = vadd.f32 %v904_v28, %v563_v35  ;;  %v1442_v44 = vpop.f32.mrb[16].mxu1 }
 0x118   :  { %502 = vst [vmem:[%s1698_s2 + $0x88] sm:$0xff] %v907_v41  ;;  %v246_v46 = vpop.f32.mrb[17].mxu0  ;;  %534 = vst [vmem:[%s1698_s2 + $0x188] sm:$0xff] %v1442_v44  ;;  %v1451_v47 = vpop.f32.mrb[17].mxu1  ;;  %v639_v51 = vmul.f32 %v907_v41, %v907_v41 }
 0x119   :  { %501 = vst [vmem:[%s1698_s2 + $0x80] sm:$0xff] %v246_v46  ;;  %v565_v48 = vadd.f32 %v564_v42, %v246_v46  ;;  %v638_v49 = vmul.f32 %v246_v46, %v246_v46  ;;  %v700_v50 = vadd.f32 %v699_v40, %v637_v39  ;;  %533 = vst [vmem:[%s1698_s2 + $0x180] sm:$0xff] %v1451_v47 }
 0x11b   :  { %v701_v52 = vadd.f32 %v700_v50, %v638_v49  ;;  %v910_v54 = vpop.f32.mrb[18].mxu0  ;;  %v566_v56 = vadd.f32 %v907_v41, %v565_v48  ;;  %v1460_v57 = vpop.f32.mrb[18].mxu1 }
 0x11c   :  { %504 = vst [vmem:[%s1698_s2 + $0x98] sm:$0xff] %v910_v54  ;;  %v256_v58 = vpop.f32.mrb[19].mxu0  ;;  %536 = vst [vmem:[%s1698_s2 + $0x198] sm:$0xff] %v1460_v57  ;;  %v1469_v59 = vpop.f32.mrb[19].mxu1  ;;  %v641_v0 = vmul.f32 %v910_v54, %v910_v54 }
 0x11d   :  { %503 = vst [vmem:[%s1698_s2 + $0x90] sm:$0xff] %v256_v58  ;;  %v567_v60 = vadd.f32 %v566_v56, %v256_v58  ;;  %v640_v61 = vmul.f32 %v256_v58, %v256_v58  ;;  %v702_v62 = vadd.f32 %v701_v52, %v639_v51  ;;  %535 = vst [vmem:[%s1698_s2 + $0x190] sm:$0xff] %v1469_v59 }
 0x11f   :  { %v703_v2 = vadd.f32 %v702_v62, %v640_v61  ;;  %v913_v3 = vpop.f32.mrb[20].mxu0  ;;  %v568_v4 = vadd.f32 %v910_v54, %v567_v60  ;;  %v1478_v5 = vpop.f32.mrb[20].mxu1 }
 0x120   :  { %506 = vst [vmem:[%s1698_s2 + $0xa8] sm:$0xff] %v913_v3  ;;  %v266_v6 = vpop.f32.mrb[21].mxu0  ;;  %538 = vst [vmem:[%s1698_s2 + $0x1a8] sm:$0xff] %v1478_v5  ;;  %v1487_v7 = vpop.f32.mrb[21].mxu1  ;;  %v643_v13 = vmul.f32 %v913_v3, %v913_v3 }
 0x121   :  { %505 = vst [vmem:[%s1698_s2 + $0xa0] sm:$0xff] %v266_v6  ;;  %v569_v8 = vadd.f32 %v568_v4, %v266_v6  ;;  %v642_v10 = vmul.f32 %v266_v6, %v266_v6  ;;  %v704_v12 = vadd.f32 %v703_v2, %v641_v0  ;;  %537 = vst [vmem:[%s1698_s2 + $0x1a0] sm:$0xff] %v1487_v7 }
 0x123   :  { %v705_v14 = vadd.f32 %v704_v12, %v642_v10  ;;  %v916_v15 = vpop.f32.mrb[22].mxu0  ;;  %v570_v16 = vadd.f32 %v913_v3, %v569_v8  ;;  %v1496_v17 = vpop.f32.mrb[22].mxu1 }
 0x124   :  { %508 = vst [vmem:[%s1698_s2 + $0xb8] sm:$0xff] %v916_v15  ;;  %v276_v18 = vpop.f32.mrb[23].mxu0  ;;  %540 = vst [vmem:[%s1698_s2 + $0x1b8] sm:$0xff] %v1496_v17  ;;  %v1505_v20 = vpop.f32.mrb[23].mxu1  ;;  %v645_v25 = vmul.f32 %v916_v15, %v916_v15 }
 0x125   :  { %507 = vst [vmem:[%s1698_s2 + $0xb0] sm:$0xff] %v276_v18  ;;  %v571_v22 = vadd.f32 %v570_v16, %v276_v18  ;;  %v644_v23 = vmul.f32 %v276_v18, %v276_v18  ;;  %v706_v24 = vadd.f32 %v705_v14, %v643_v13  ;;  %539 = vst [vmem:[%s1698_s2 + $0x1b0] sm:$0xff] %v1505_v20 }
 0x127   :  { %v707_v27 = vadd.f32 %v706_v24, %v644_v23  ;;  %v919_v28 = vpop.f32.mrb[24].mxu0  ;;  %v572_v30 = vadd.f32 %v916_v15, %v571_v22  ;;  %v1514_v32 = vpop.f32.mrb[24].mxu1 }
 0x128   :  { %510 = vst [vmem:[%s1698_s2 + $0xc8] sm:$0xff] %v919_v28  ;;  %v286_v35 = vpop.f32.mrb[25].mxu0  ;;  %542 = vst [vmem:[%s1698_s2 + $0x1c8] sm:$0xff] %v1514_v32  ;;  %v1523_v37 = vpop.f32.mrb[25].mxu1  ;;  %v647_v41 = vmul.f32 %v919_v28, %v919_v28 }
 0x129   :  { %509 = vst [vmem:[%s1698_s2 + $0xc0] sm:$0xff] %v286_v35  ;;  %v573_v38 = vadd.f32 %v572_v30, %v286_v35  ;;  %v646_v39 = vmul.f32 %v286_v35, %v286_v35  ;;  %v708_v40 = vadd.f32 %v707_v27, %v645_v25  ;;  %541 = vst [vmem:[%s1698_s2 + $0x1c0] sm:$0xff] %v1523_v37 }
 0x12a   :  { %v654_v30 = vmul.f32 %v1307_v29, %v1307_v29 }
 0x12b   :  { %v709_v42 = vadd.f32 %v708_v40, %v646_v39  ;;  %v922_v46 = vpop.f32.mrb[26].mxu0  ;;  %v574_v48 = vadd.f32 %v919_v28, %v573_v38  ;;  %v1532_v49 = vpop.f32.mrb[26].mxu1  ;;  %v655_v39 = vmul.f32 %v1298_v26, %v1298_v26 }
 0x12c   :  { %512 = vst [vmem:[%s1698_s2 + $0xd8] sm:$0xff] %v922_v46  ;;  %v296_v50 = vpop.f32.mrb[27].mxu0  ;;  %544 = vst [vmem:[%s1698_s2 + $0x1d8] sm:$0xff] %v1532_v49  ;;  %v1541_v51 = vpop.f32.mrb[27].mxu1  ;;  %v649_v58 = vmul.f32 %v922_v46, %v922_v46 }
 0x12d   :  { %511 = vst [vmem:[%s1698_s2 + $0xd0] sm:$0xff] %v296_v50  ;;  %v575_v52 = vadd.f32 %v574_v48, %v296_v50  ;;  %v648_v54 = vmul.f32 %v296_v50, %v296_v50  ;;  %v710_v56 = vadd.f32 %v709_v42, %v647_v41  ;;  %543 = vst [vmem:[%s1698_s2 + $0x1d0] sm:$0xff] %v1541_v51 }
 0x12e   :  { %v656_v42 = vmul.f32 %v1325_v36, %v1325_v36  ;;  %v657_v50 = vmul.f32 %v1316_v34, %v1316_v34 }
 0x12f   :  { %v711_v60 = vadd.f32 %v710_v56, %v648_v54  ;;  %v925_v61 = vpop.f32.mrb[28].mxu0  ;;  %v576_v62 = vadd.f32 %v922_v46, %v575_v52  ;;  %v1550_v0 = vpop.f32.mrb[28].mxu1 }
 0x130   :  { %514 = vst [vmem:[%s1698_s2 + $0xe8] sm:$0xff] %v925_v61  ;;  %v306_v2 = vpop.f32.mrb[29].mxu0  ;;  %546 = vst [vmem:[%s1698_s2 + $0x1e8] sm:$0xff] %v1550_v0  ;;  %v1559_v3 = vpop.f32.mrb[29].mxu1  ;;  %v651_v10 = vmul.f32 %v925_v61, %v925_v61 }
 0x131   :  { %513 = vst [vmem:[%s1698_s2 + $0xe0] sm:$0xff] %v306_v2  ;;  %v577_v4 = vadd.f32 %v576_v62, %v306_v2  ;;  %v650_v6 = vmul.f32 %v306_v2, %v306_v2  ;;  %v712_v8 = vadd.f32 %v711_v60, %v649_v58  ;;  %545 = vst [vmem:[%s1698_s2 + $0x1e0] sm:$0xff] %v1559_v3 }
 0x133   :  { %v713_v12 = vadd.f32 %v712_v8, %v650_v6  ;;  %v928_v13 = vpop.f32.mrb[30].mxu0  ;;  %v578_v14 = vadd.f32 %v925_v61, %v577_v4  ;;  %v1568_v15 = vpop.f32.mrb[30].mxu1 }
 0x134   :  { %516 = vst [vmem:[%s1698_s2 + $0xf8] sm:$0xff] %v928_v13  ;;  %v316_v16 = vpop.f32.mrb[31].mxu0  ;;  %548 = vst [vmem:[%s1698_s2 + $0x1f8] sm:$0xff] %v1568_v15  ;;  %v1577_v18 = vpop.f32.mrb[31].mxu1  ;;  %v653_v25 = vmul.f32 %v928_v13, %v928_v13 }
 0x135   :  { %515 = vst [vmem:[%s1698_s2 + $0xf0] sm:$0xff] %v316_v16  ;;  %v579_v22 = vadd.f32 %v578_v14, %v316_v16  ;;  %v652_v23 = vmul.f32 %v316_v16, %v316_v16  ;;  %v714_v24 = vadd.f32 %v713_v12, %v651_v10  ;;  %547 = vst [vmem:[%s1698_s2 + $0x1f0] sm:$0xff] %v1577_v18 }
 0x137   :  { %v580_v27 = vadd.f32 %v928_v13, %v579_v22  ;;  %v715_v28 = vadd.f32 %v714_v24, %v652_v23 }
 0x139   :  { %v716_v35 = vadd.f32 %v715_v28, %v653_v25  ;;  %v581_v38 = vadd.f32 %v580_v27, %v1307_v29  ;;  %v658_v29 = vmul.f32 %v1343_v45, %v1343_v45 }
 0x13b   :  { %v717_v40 = vadd.f32 %v716_v35, %v654_v30  ;;  %v582_v41 = vadd.f32 %v1298_v26, %v581_v38  ;;  %v659_v26 = vmul.f32 %v1334_v43, %v1334_v43 }
 0x13d   :  { %v583_v46 = vadd.f32 %v582_v41, %v1325_v36  ;;  %v718_v48 = vadd.f32 %v717_v40, %v655_v39  ;;  %v660_v36 = vmul.f32 %v1361_v55, %v1361_v55 }
 0x13f   :  { %v719_v52 = vadd.f32 %v718_v48, %v656_v42  ;;  %v584_v54 = vadd.f32 %v1316_v34, %v583_v46  ;;  %v661_v34 = vmul.f32 %v1352_v53, %v1352_v53 }
 0x141   :  { %v585_v56 = vadd.f32 %v584_v54, %v1343_v45  ;;  %v720_v58 = vadd.f32 %v719_v52, %v657_v50  ;;  %v662_v45 = vmul.f32 %v1379_v1, %v1379_v1 }
 0x143   :  { %v721_v60 = vadd.f32 %v720_v58, %v658_v29  ;;  %v586_v61 = vadd.f32 %v1334_v43, %v585_v56  ;;  %v663_v43 = vmul.f32 %v1370_v63, %v1370_v63 }
 0x145   :  { %v587_v62 = vadd.f32 %v586_v61, %v1361_v55  ;;  %v722_v2 = vadd.f32 %v721_v60, %v659_v26  ;;  %v664_v55 = vmul.f32 %v1397_v11, %v1397_v11 }
 0x147   :  { %v723_v4 = vadd.f32 %v722_v2, %v660_v36  ;;  %v588_v6 = vadd.f32 %v1352_v53, %v587_v62  ;;  %v665_v53 = vmul.f32 %v1388_v9, %v1388_v9 }
 0x149   :  { %v589_v8 = vadd.f32 %v588_v6, %v1379_v1  ;;  %v724_v10 = vadd.f32 %v723_v4, %v661_v34  ;;  %v666_v1 = vmul.f32 %v1415_v21, %v1415_v21 }
 0x14b   :  { %v725_v12 = vadd.f32 %v724_v10, %v662_v45  ;;  %v590_v13 = vadd.f32 %v1370_v63, %v589_v8  ;;  %v667_v63 = vmul.f32 %v1406_v19, %v1406_v19 }
 0x14d   :  { %v591_v14 = vadd.f32 %v590_v13, %v1397_v11  ;;  %v726_v16 = vadd.f32 %v725_v12, %v663_v43  ;;  %v668_v11 = vmul.f32 %v1433_v33, %v1433_v33 }
 0x14f   :  { %v727_v22 = vadd.f32 %v726_v16, %v664_v55  ;;  %v592_v23 = vadd.f32 %v1388_v9, %v591_v14  ;;  %v669_v9 = vmul.f32 %v1424_v31, %v1424_v31 }
 0x151   :  { %v593_v24 = vadd.f32 %v592_v23, %v1415_v21  ;;  %v728_v25 = vadd.f32 %v727_v22, %v665_v53  ;;  %v670_v21 = vmul.f32 %v1451_v47, %v1451_v47 }
 0x153   :  { %v729_v27 = vadd.f32 %v728_v25, %v666_v1  ;;  %v594_v28 = vadd.f32 %v1406_v19, %v593_v24  ;;  %v671_v19 = vmul.f32 %v1442_v44, %v1442_v44 }
 0x155   :  { %v595_v30 = vadd.f32 %v594_v28, %v1433_v33  ;;  %v730_v35 = vadd.f32 %v729_v27, %v667_v63  ;;  %v672_v33 = vmul.f32 %v1469_v59, %v1469_v59 }
 0x157   :  { %v731_v38 = vadd.f32 %v730_v35, %v668_v11  ;;  %v596_v39 = vadd.f32 %v1424_v31, %v595_v30  ;;  %v673_v31 = vmul.f32 %v1460_v57, %v1460_v57 }
 0x159   :  { %v597_v40 = vadd.f32 %v596_v39, %v1451_v47  ;;  %v732_v41 = vadd.f32 %v731_v38, %v669_v9  ;;  %v674_v47 = vmul.f32 %v1487_v7, %v1487_v7 }
 0x15b   :  { %v733_v42 = vadd.f32 %v732_v41, %v670_v21  ;;  %v598_v46 = vadd.f32 %v1442_v44, %v597_v40  ;;  %v675_v44 = vmul.f32 %v1478_v5, %v1478_v5 }
 0x15d   :  { %v599_v48 = vadd.f32 %v598_v46, %v1469_v59  ;;  %v734_v50 = vadd.f32 %v733_v42, %v671_v19  ;;  %v676_v59 = vmul.f32 %v1505_v20, %v1505_v20 }
 0x15f   :  { %v735_v52 = vadd.f32 %v734_v50, %v672_v33  ;;  %v600_v54 = vadd.f32 %v1460_v57, %v599_v48  ;;  %v677_v57 = vmul.f32 %v1496_v17, %v1496_v17 }
 0x161   :  { %v601_v29 = vadd.f32 %v600_v54, %v1487_v7  ;;  %v736_v56 = vadd.f32 %v735_v52, %v673_v31  ;;  %v678_v7 = vmul.f32 %v1523_v37, %v1523_v37 }
 0x163   :  { %v737_v58 = vadd.f32 %v736_v56, %v674_v47  ;;  %v602_v26 = vadd.f32 %v1478_v5, %v601_v29  ;;  %v679_v5 = vmul.f32 %v1514_v32, %v1514_v32 }
 0x165   :  { %v603_v60 = vadd.f32 %v602_v26, %v1505_v20  ;;  %v738_v61 = vadd.f32 %v737_v58, %v675_v44  ;;  %v680_v20 = vmul.f32 %v1541_v51, %v1541_v51 }
 0x167   :  { %v739_v36 = vadd.f32 %v738_v61, %v676_v59  ;;  %v604_v62 = vadd.f32 %v1496_v17, %v603_v60  ;;  %v681_v17 = vmul.f32 %v1532_v49, %v1532_v49 }
 0x169   :  { %v605_v2 = vadd.f32 %v604_v62, %v1523_v37  ;;  %v740_v34 = vadd.f32 %v739_v36, %v677_v57  ;;  %v682_v37 = vmul.f32 %v1559_v3, %v1559_v3 }
 0x16b   :  { %v741_v4 = vadd.f32 %v740_v34, %v678_v7  ;;  %v606_v6 = vadd.f32 %v1514_v32, %v605_v2  ;;  %v683_v32 = vmul.f32 %v1550_v0, %v1550_v0 }
 0x16d   :  { %v607_v45 = vadd.f32 %v606_v6, %v1541_v51  ;;  %v742_v8 = vadd.f32 %v741_v4, %v679_v5  ;;  %v684_v51 = vmul.f32 %v1577_v18, %v1577_v18 }
 0x16f   :  { %v743_v10 = vadd.f32 %v742_v8, %v680_v20  ;;  %v608_v43 = vadd.f32 %v1532_v49, %v607_v45  ;;  %v685_v49 = vmul.f32 %v1568_v15, %v1568_v15 }
 0x171   :  { %v609_v12 = vadd.f32 %v608_v43, %v1559_v3  ;;  %v744_v13 = vadd.f32 %v743_v10, %v681_v17 }
 0x173   :  { %v745_v55 = vadd.f32 %v744_v13, %v682_v37  ;;  %v610_v14 = vadd.f32 %v1550_v0, %v609_v12 }
 0x175   :  { %v611_v16 = vadd.f32 %v610_v14, %v1577_v18  ;;  %v746_v53 = vadd.f32 %v745_v55, %v683_v32  ;;  %v549_v18 = vld [vmem:[%s1696_s3] sm:$0x1] }
 0x177   :  { %v612_v22 = vadd.f32 %v1568_v15, %v611_v16  ;;  %v747_v23 = vadd.f32 %v746_v53, %v684_v51  ;;  %v621_v15 = vld [vmem:[%s1697_s4] sm:$0x1] }
 0x179   :  { %v613_v3 = vrot.slane %v612_v22, 4  ;;  %v748_v1 = vadd.f32 %v747_v23, %v685_v49 }
 0x17b   :  { %v614_v24 = vadd.f32 %v613_v3, %v612_v22  ;;  %v749_v25 = vrot.slane %v748_v1, 4 }
 0x17d   :  { %v615_v63 = vrot.slane %v614_v24, 2  ;;  %v750_v27 = vadd.f32 %v749_v25, %v748_v1 }
 0x17f   :  { %v616_v28 = vadd.f32 %v615_v63, %v614_v24  ;;  %v751_v0 = vrot.slane %v750_v27, 2 }
 0x181   :  { %v617_v11 = vrot.slane %v616_v28, 1  ;;  %v752_v30 = vadd.f32 %v751_v0, %v750_v27 }
 0x183   :  { %v618_v35 = vadd.f32 %v617_v11, %v616_v28  ;;  %v753_v9 = vrot.slane %v752_v30, 1 }
 0x185   :  { %v619_v38 = vadd.f32 %v618_v35, %v549_v18  ;;  %v754_v39 = vadd.f32 %v753_v9, %v752_v30 }
 0x187   :  { %620 = vst [vmem:[%s1696_s3] sm:$0x1] %v619_v38  ;;  %v755_v21 = vadd.f32 %v754_v39, %v621_v15 }
 0x189   :  { %756 = vst [vmem:[%s1697_s4] sm:$0x1] %v755_v21 }

</bundles_post_ra>
